<compile_context>
chip_gen: v6e
topology: v6e:2x2x1
jax: 0.10.0
libtpu: 0.0.40
codegen_flags: <defaults>
</compile_context>

<pallas_src>
import functools
import math

import jax
import jax.numpy as jnp
from jax.experimental import pallas as pl
from jax.experimental.pallas import tpu as pltpu

LANE = 128


def _round_up(v, m):
    return ((v + m - 1) // m) * m


def graphconv_kernel(adj_ref, x_ref, w_ref, b_ref, o_ref, acc_ref, *, tm, tk, dinp):
    """Grid: (row tiles "parallel", neighbor/contraction tiles "arbitrary")."""
    i = pl.program_id(0)
    k = pl.program_id(1)

    @pl.when(k == 0)
    def _():
        # Zero the aggregation half; stash the (f32-upcast) root-feature rows in
        # the upper lane half so the finalize is a single fused 2*dinp-deep
        # matmul with no lane-axis concatenate.
        acc_ref[:, :dinp] = jnp.zeros((tm, dinp), jnp.float32)
        row0 = pl.multiple_of(i * tm, tm)
        acc_ref[:, dinp:] = x_ref[pl.ds(row0, tm), :].astype(jnp.float32)

    # Neighborhood sum-aggregation: agg += A_tile @ X_tile.
    # Native bf16 x bf16 -> f32 MXU path; x is sliced from the VMEM-resident
    # buffer (no per-row-tile HBM re-stream).
    col0 = pl.multiple_of(k * tk, tk)
    acc_ref[:, :dinp] += jnp.dot(adj_ref[...], x_ref[pl.ds(col0, tk), :],
                                 preferred_element_type=jnp.float32)

    @pl.when(k == pl.num_programs(1) - 1)
    def _():
        # Fused weight matmul: [agg | x] @ [W_rel ; W_root] (single 2*dinp-deep
        # contraction), then bias + ReLU.  Dropout(p=0.0) is the identity.
        out = jnp.dot(acc_ref[...], w_ref[...], preferred_element_type=jnp.float32)
        out = out + b_ref[...]
        o_ref[...] = jnp.maximum(out, 0.0).astype(o_ref.dtype)


def graph_conv_layer(x, edge_index, w_rel, w_root, b_rel, *,
                     dropout_p=0.0, tm=256, tk=512):
    """GraphConv(aggr='add') + ReLU + Dropout forward.

    x: [N, Din] f32; edge_index: [2, E] i32 (row 0 = source j, row 1 = target i);
    w_rel / w_root: [Din, Dout] (transposed torch Linear weights); b_rel: [Dout].
    """
    # TODO(synk): training-mode dropout (p > 0) via pltpu.prng_* not implemented;
    # p == 0 is the identity (matches eval semantics of the module).
    assert dropout_p == 0.0

    n, din = x.shape
    dout = w_rel.shape[1]

    # ---- Padded / tile sizes: lane dims to 128, node dim to tile multiples. ----
    dinp = _round_up(din, LANE)
    doutp = _round_up(dout, LANE)
    n_lane = _round_up(n, LANE)

    tm = min(tm, n_lane)
    if n_lane >= 2 * LANE:
        # Keep >= 2 row tiles so the "parallel" axis can split across v7x's two
        # TensorCores (neutral on single-TC v5e/v6e).
        tm = min(tm, _round_up(n_lane // 2, LANE))
    tk = min(tk, n_lane)
    npad = _round_up(n, math.lcm(tm, tk))

    src, dst = edge_index[0], edge_index[1]
    # Dense adjacency A[i, j] = #edges (j -> i); built in f32 (exact counts),
    # stored in bf16 to halve HBM bytes on the dominant N*N stream.
    # NOTE: parallel-edge multiplicities > 256 would round in bf16.
    adj = (jnp.zeros((npad, npad), jnp.float32)
           .at[dst, src].add(1.0)
           .astype(jnp.bfloat16))

    # x in bf16: halves its HBM bytes and enables the native bf16 MXU path.
    x_p = (jnp.zeros((npad, dinp), jnp.float32)
           .at[:n, :din].set(x)
           .astype(jnp.bfloat16))

    # Stacked weights for the fused matmul: rows [0, dinp) -> W_rel, rows
    # [dinp, 2*dinp) -> W_root (zero padding rows contribute nothing).
    w_fused = (jnp.zeros((2 * dinp, doutp), jnp.float32)
               .at[:din, :dout].set(w_rel)
               .at[dinp:dinp + din, :dout].set(w_root))
    bias2d = jnp.zeros((1, doutp), jnp.float32).at[0, :dout].set(b_rel)

    grid = (npad // tm, npad // tk)

    # ---- VMEM budget from the actual footprint (cap 48 MiB for v7x 64 MiB/TC). ----
    footprint = (2 * tm * tk * 2           # double-buffered bf16 adjacency tiles
                 + 2 * npad * dinp * 2     # resident bf16 x (x2 for safety)
                 + 2 * 2 * dinp * doutp * 4  # stacked weights (resident)
                 + 2 * doutp * 4           # bias
                 + 2 * tm * doutp * 4      # output tiles
                 + tm * 2 * dinp * 4)      # f32 accumulator scratch
    vmem_limit = int(min(48 * 2**20, max(4 * 2**20, 2 * footprint)))

    cost = pl.CostEstimate(
        flops=2 * npad * npad * dinp + 2 * npad * (2 * dinp) * doutp,
        transcendentals=0,
        bytes_accessed=(npad * npad * 2          # adjacency (bf16), single pass
                        + npad * dinp * 2        # x (bf16), single pass
                        + 2 * dinp * doutp * 4   # stacked weights
                        + doutp * 4              # bias
                        + npad * doutp * 4),     # output
    )

    kernel = functools.partial(graphconv_kernel, tm=tm, tk=tk, dinp=dinp)

    out_p = pl.pallas_call(
        kernel,
        out_shape=jax.ShapeDtypeStruct((npad, doutp), jnp.float32),
        grid_spec=pltpu.PrefetchScalarGridSpec(
            num_scalar_prefetch=0,
            grid=grid,
            in_specs=[
                pl.BlockSpec((tm, tk), lambda i, k: (i, k)),           # A tile (streamed)
                pl.BlockSpec((npad, dinp), lambda i, k: (0, 0)),       # x (VMEM resident)
                pl.BlockSpec((2 * dinp, doutp), lambda i, k: (0, 0)),  # stacked W (resident)
                pl.BlockSpec((1, doutp), lambda i, k: (0, 0)),         # bias (resident)
            ],
            out_specs=pl.BlockSpec((tm, doutp), lambda i, k: (i, 0)),
            scratch_shapes=[pltpu.VMEM((tm, 2 * dinp), jnp.float32)],
        ),
        compiler_params=pltpu.CompilerParams(
            dimension_semantics=("parallel", "arbitrary"),
            vmem_limit_bytes=vmem_limit),
        cost_estimate=cost,
    )(adj, x_p, w_fused, bias2d)

    return out_p[:n, :dout]


if __name__ == "__main__":
    key = jax.random.PRNGKey(0)
    k_x, k_e, k_wr, k_wo, k_b = jax.random.split(key, 5)

    N, E = 256, 1024          # nodes, edges
    IN_DIM, OUT_DIM = 32, 32

    x = jax.random.normal(k_x, (N, IN_DIM), jnp.float32)
    edge_index = jax.random.randint(k_e, (2, E), 0, N, jnp.int32)
    # torch Linear weight is [out, in]; store transposed [in, out] for x @ W.
    w_rel = jax.random.normal(k_wr, (IN_DIM, OUT_DIM), jnp.float32) * 0.1
    w_root = jax.random.normal(k_wo, (IN_DIM, OUT_DIM), jnp.float32) * 0.1
    b_rel = jax.random.normal(k_b, (OUT_DIM,), jnp.float32) * 0.1

    out = graph_conv_layer(x, edge_index, w_rel, w_root, b_rel, dropout_p=0.0)
    out = jax.block_until_ready(out)

    # References.
    src, dst = edge_index[0], edge_index[1]
    adj_ref = jnp.zeros((N, N), jnp.float32).at[dst, src].add(1.0)

    # (a) exact math the kernel performs (x rounded once to bf16, f32 elsewhere)
    x_bf = x.astype(jnp.bfloat16).astype(jnp.float32)
    ref_bf = jnp.maximum((adj_ref @ x_bf) @ w_rel + b_rel + x_bf @ w_root, 0.0)
    # (b) pure-f32 module reference
    ref_f32 = jnp.maximum((adj_ref @ x) @ w_rel + b_rel + x @ w_root, 0.0)

    err_bf = jnp.max(jnp.abs(out - ref_bf))
    err_f32 = jnp.max(jnp.abs(out - ref_f32))
    assert jnp.allclose(out, ref_bf, atol=1e-2, rtol=1e-2), (
        f"mismatch vs bf16-x reference (max abs err {err_bf})")
    assert jnp.allclose(out, ref_f32, atol=5e-2, rtol=5e-2), (
        f"mismatch vs f32 reference (max abs err {err_f32})")

    print("KERNEL_OK")
</pallas_src>

<mosaic_0001>
module attributes {stable_mosaic.version = 11 : i64} {
  func.func @graphconv_kernel(%arg0: i32, %arg1: i32, %arg2: memref<128x256xbf16, #tpu.memory_space<vmem>>, %arg3: memref<256x128xbf16, #tpu.memory_space<vmem>>, %arg4: memref<256x128xf32, #tpu.memory_space<vmem>>, %arg5: memref<1x128xf32, #tpu.memory_space<vmem>>, %arg6: memref<128x128xf32, #tpu.memory_space<vmem>>, %arg7: memref<128x256xf32, #tpu.memory_space<vmem>>) attributes {dimension_semantics = [#tpu.dimension_semantics<parallel>, #tpu.dimension_semantics<arbitrary>], iteration_bounds = array<i64: 2, 1>, scalar_prefetch = 0 : i64, scratch_operands = 1 : i64, tpu.core_type = #tpu.core_type<tc>, window_params = [{transform_indices = @transform_0, window_bounds = array<i64: 128, 256>}, {pipeline_mode = #tpu.pipeline_mode<synchronous>, transform_indices = @transform_1, window_bounds = array<i64: 256, 128>}, {pipeline_mode = #tpu.pipeline_mode<synchronous>, transform_indices = @transform_2, window_bounds = array<i64: 256, 128>}, {pipeline_mode = #tpu.pipeline_mode<synchronous>, transform_indices = @transform_3, window_bounds = array<i64: 1, 128>}, {transform_indices = @transform_4, window_bounds = array<i64: 128, 128>}]} {
    %c0_i32 = arith.constant 0 : i32
    %0 = arith.cmpi eq, %arg1, %c0_i32 : i32
    %1 = arith.extui %0 : i1 to i32
    %c0_i32_0 = arith.constant 0 : i32
    %2 = arith.cmpi ne, %1, %c0_i32_0 : i32
    scf.if %2 {
      %cst_9 = arith.constant 0.000000e+00 : f32
      %15 = vector.broadcast %cst_9 : f32 to vector<128x128xf32>
      %c0_10 = arith.constant 0 : index
      %c0_11 = arith.constant 0 : index
      %16 = vector.load %arg7[%c0_10, %c0_11] : memref<128x256xf32, #tpu.memory_space<vmem>>, vector<128x128xf32>
      tpu.vector_store %arg7[%c0_10, %c0_11], %15 {strides = array<i32>} : memref<128x256xf32, #tpu.memory_space<vmem>>, vector<128x128xf32>,
      %c128_i32 = arith.constant 128 : i32
      %17 = arith.muli %arg0, %c128_i32 : i32
      %18 = tpu.assume_multiple %17, 128 : i32
      %19 = arith.index_cast %18 : i32 to index
      %c0_12 = arith.constant 0 : index
      %20 = vector.load %arg3[%19, %c0_12] : memref<256x128xbf16, #tpu.memory_space<vmem>>, vector<128x128xbf16>
      %21 = arith.extf %20 : vector<128x128xbf16> to vector<128x128xf32>
      %c0_13 = arith.constant 0 : index
      %c128 = arith.constant 128 : index
      %22 = vector.load %arg7[%c0_13, %c128] : memref<128x256xf32, #tpu.memory_space<vmem>>, vector<128x128xf32>
      tpu.vector_store %arg7[%c0_13, %c128], %21 {strides = array<i32>} : memref<128x256xf32, #tpu.memory_space<vmem>>, vector<128x128xf32>,
    } else {
    }
    %c256_i32 = arith.constant 256 : i32
    %3 = arith.muli %arg1, %c256_i32 : i32
    %4 = tpu.assume_multiple %3, 256 : i32
    %c0 = arith.constant 0 : index
    %c0_1 = arith.constant 0 : index
    %5 = vector.load %arg7[%c0, %c0_1] : memref<128x256xf32, #tpu.memory_space<vmem>>, vector<128x128xf32>
    %c0_2 = arith.constant 0 : index
    %c0_3 = arith.constant 0 : index
    %6 = vector.load %arg2[%c0_2, %c0_3] : memref<128x256xbf16, #tpu.memory_space<vmem>>, vector<128x256xbf16>
    %7 = arith.index_cast %4 : i32 to index
    %c0_4 = arith.constant 0 : index
    %8 = vector.load %arg3[%7, %c0_4] : memref<256x128xbf16, #tpu.memory_space<vmem>>, vector<256x128xbf16>
    %cst = arith.constant dense<0.000000e+00> : vector<128x128xf32>
    %9 = tpu.matmul %6, %8, %cst {dimension_numbers = #tpu.dot_dimension_numbers<[1], [0], [0], [1], [0, 0, 1, 1], [], []>} : vector<128x256xbf16>, vector<256x128xbf16>, vector<128x128xf32> -> vector<128x128xf32>
    %10 = arith.addf %5, %9 : vector<128x128xf32>
    %c0_5 = arith.constant 0 : index
    %c0_6 = arith.constant 0 : index
    %11 = vector.load %arg7[%c0_5, %c0_6] : memref<128x256xf32, #tpu.memory_space<vmem>>, vector<128x128xf32>
    tpu.vector_store %arg7[%c0_5, %c0_6], %10 {strides = array<i32>} : memref<128x256xf32, #tpu.memory_space<vmem>>, vector<128x128xf32>,
    %c0_i32_7 = arith.constant 0 : i32
    %12 = arith.cmpi eq, %arg1, %c0_i32_7 : i32
    %13 = arith.extui %12 : i1 to i32
    %c0_i32_8 = arith.constant 0 : i32
    %14 = arith.cmpi ne, %13, %c0_i32_8 : i32
    scf.if %14 {
      %c0_9 = arith.constant 0 : index
      %c0_10 = arith.constant 0 : index
      %15 = vector.load %arg7[%c0_9, %c0_10] : memref<128x256xf32, #tpu.memory_space<vmem>>, vector<128x256xf32>
      %c0_11 = arith.constant 0 : index
      %c0_12 = arith.constant 0 : index
      %16 = vector.load %arg4[%c0_11, %c0_12] : memref<256x128xf32, #tpu.memory_space<vmem>>, vector<256x128xf32>
      %cst_13 = arith.constant dense<0.000000e+00> : vector<128x128xf32>
      %17 = tpu.matmul %15, %16, %cst_13 {dimension_numbers = #tpu.dot_dimension_numbers<[1], [0], [0], [1], [0, 0, 1, 1], [], []>} : vector<128x256xf32>, vector<256x128xf32>, vector<128x128xf32> -> vector<128x128xf32>
      %c0_14 = arith.constant 0 : index
      %c0_15 = arith.constant 0 : index
      %18 = vector.load %arg5[%c0_14, %c0_15] : memref<1x128xf32, #tpu.memory_space<vmem>>, vector<1x128xf32>
      %19 = vector.broadcast %18 : vector<1x128xf32> to vector<128x128xf32>
      %20 = arith.addf %17, %19 : vector<128x128xf32>
      %cst_16 = arith.constant 0.000000e+00 : f32
      %21 = vector.broadcast %cst_16 : f32 to vector<128x128xf32>
      %22 = arith.maximumf %20, %21 : vector<128x128xf32>
      %c0_17 = arith.constant 0 : index
      %c0_18 = arith.constant 0 : index
      %23 = vector.load %arg6[%c0_17, %c0_18] : memref<128x128xf32, #tpu.memory_space<vmem>>, vector<128x128xf32>
      tpu.vector_store %arg6[%c0_17, %c0_18], %22 {strides = array<i32>} : memref<128x128xf32, #tpu.memory_space<vmem>>, vector<128x128xf32>,
    } else {
    }
    return
  }
  func.func @transform_0(%arg0: i32, %arg1: i32) -> (i32, i32) {
    %c0_i32 = arith.constant 0 : i32
    return %arg0, %arg1 : i32, i32
  }
  func.func @transform_1(%arg0: i32, %arg1: i32) -> (i32, i32) {
    %c0_i32 = arith.constant 0 : i32
    %c0_i32_0 = arith.constant 0 : i32
    %c0_i32_1 = arith.constant 0 : i32
    return %c0_i32, %c0_i32_0 : i32, i32
  }
  func.func @transform_2(%arg0: i32, %arg1: i32) -> (i32, i32) {
    %c0_i32 = arith.constant 0 : i32
    %c0_i32_0 = arith.constant 0 : i32
    %c0_i32_1 = arith.constant 0 : i32
    return %c0_i32, %c0_i32_0 : i32, i32
  }
  func.func @transform_3(%arg0: i32, %arg1: i32) -> (i32, i32) {
    %c0_i32 = arith.constant 0 : i32
    %c0_i32_0 = arith.constant 0 : i32
    %c0_i32_1 = arith.constant 0 : i32
    return %c0_i32, %c0_i32_0 : i32, i32
  }
  func.func @transform_4(%arg0: i32, %arg1: i32) -> (i32, i32) {
    %c0_i32 = arith.constant 0 : i32
    %c0_i32_0 = arith.constant 0 : i32
    return %arg0, %c0_i32 : i32, i32
  }
}

</mosaic_0001>

<bundles_post_ra>
// kernel: tpu_custom_call.1
= control target key start
LH: loop header
LB: loop body
LE: loop exit
PB: predicated region body
PF: predicated region fallthrough
CT: control target
= control target key end

     0   :  { %9 = vsyncpa [#allocation4], 0  ;;  %s1923_s0 = inlined_call_operand.hbm [shape: bf16[256,256], index: 0, kind: input, shape index: {}]   ;;  %s1924_s1 = inlined_call_operand.hbm [shape: bf16[256,128], index: 1, kind: input, shape index: {}]   ;;  %s1925_s2 = inlined_call_operand.hbm [shape: f32[256,128], index: 2, kind: input, shape index: {}]   ;;  %s1926_s3 = inlined_call_operand.vmem [shape: f32[1,128], index: 3, kind: input, shape index: {}]   ;;  %s1927_s4 = inlined_call_operand.hbm [shape: f32[256,128], index: 4, kind: output, shape index: {}]  }
   0x1   :  { %11 = vsyncpa [#allocation4 + $0x1], 0 }
   0x2   :  { %12 = vsyncpa [#allocation7], 0 }
   0x3   :  { %13 = vsyncpa [#allocation5], 0 }
   0x4   :  { %15 = vsyncpa [#allocation5 + $0x1], 0  ;;  %s1656_s15 = smov 0   ;;  %s1658_s16 = smov 0  }
   0x5   :  { %s1660_s17 = smov 0   ;;  %s1662_s18 = smov 0  }
   0x6   :  { %s1664_s19 = smov 0   ;;  %s1666_s20 = smov 0  }
   0x7 LB: > { %s1085_s21 = sadd.s32 4294967295, %s1619_s20   ;;  %s1086_s22 = sadd.s32 4294967294, %s1619_s20   ;;  %s1619_s20 = sphi %s1666_s20, %s21_s20   ;;  %s1615_s19 = sphi %s1664_s19, %s1951_s19   ;;  %s1611_s18 = sphi %s1662_s18, %s1950_s18   ;;  %s1607_s17 = sphi %s1660_s17, %s1949_s17   ;;  %s1603_s16 = sphi %s1658_s16, %s1948_s16   ;;  %s1599_s15 = sphi %s1656_s15, %s1947_s15  }
   0x8   : > { %p55_p0 = scmp.ne.s32.totalorder %s1603_s16, %s1599_s15  ;;  %p1690_p1 = scmp.eq.s32.totalorder %s1085_s21, 0 }
   0x9   : > { %p1694_p2 = scmp.eq.s32.totalorder %s1085_s21, 1  ;;  %p148_p3 = scmp.eq.s32.totalorder %s1086_s22, 1 }
   0xa   : > { %s1933_s23 = scalar_select %p1690_p1, 1, 0 }
   0xb   : > { %p1700_p4 = por %p1690_p1, %p55_p0  ;;  %p1087_p5 = scmp.ge.s32.totalorder %s1619_s20, 1 }
   0xc   : > { %p1705_p6 = por %p148_p3, %p55_p0  ;;  %p155_p7 = scmp.lt.s32.totalorder %s1619_s20, 3 }
   0xd   : > { %s1935_s25 = scalar_select %p1700_p4, 1, 0 }
   0xe   : > { %s1936_s26 = scalar_select %p1705_p6, 1, 0 }
   0xf   : > { %p1710_p8 = pnand %p1087_p5, %p155_p7  ;;  %s1621_s28 = smov [#allocation6]  }
  0x10   : > { %s167_s29 = sshll.u32 %s1621_s28, 4  ;;  %s1622_s5 = smov [#allocation8]   ;;  %s168_s29 = int_to_ptr.vmem [resolvable:$true] %s167_s29 }
  0x11   : > { %p1338_p9 = pneg %p1710_p8  ;;  %s180_s6 = sshll.u32 %s1622_s5, 4  ;;  %s181_s6 = int_to_ptr.vmem [resolvable:$true] %s180_s6 }
  0x12   : > { %s1466_s7 = scalar_lea.vmem %s168_s29, 2048  ;;  %p1474_p5 = scmp.lt.s32.totalorder %s168_s29, %s168_s29 }
  0x13   : > { %p1719_p11 = pnand %p1338_p9, %p1690_p1  ;;  %p1467_p13 = scmp.ne.s32.totalorder %s168_s29, %s1466_s7 }
  0x14   : > { %p1475_p7 = scmp.lt.s32.totalorder %s1466_s7, %s1466_s7 }
  0x15   : > { %p1457_p12 = pneg %p1719_p11 }
  0x16   : > { %p1476_p10 = por %p1475_p7, %p1474_p5 }
  0x17   : > { %p1469_p0 = pnand %p1467_p13, %p1457_p12 }
  0x19   : > { %p1470_p3 = pneg %p1469_p0 }
  0x1b   : > { %p1477_p9 = pnand %p1476_p10, %p1470_p3 }
  0x1d   : > { %1480 = shalt.err (!%p1477_p9)
}
  0x1e   : > { %s1623_s8 = smov 64   ;;  %s1624_s9 = smov 4  }
  0x1f   : > { %1341 = dma.hbm_to_vmem [thread:$0]  (!%p1719_p11), %s1924_s1, 2048, %s168_s29, [#allocation7], %s1623_s8, %s1623_s8, %s1624_s9  }
  0x20   : > { %s1492_s12 = scalar_lea.vmem %s181_s6, 4096  ;;  %p1500_p1 = scmp.lt.s32.totalorder %s181_s6, %s181_s6 }
  0x21   : > { %p1493_p6 = scmp.ne.s32.totalorder %s181_s6, %s1492_s12  ;;  %p1501_p4 = scmp.lt.s32.totalorder %s1492_s12, %s1492_s12 }
  0x23   : > { %p1495_p13 = pnand %p1493_p6, %p1457_p12  ;;  %p1502_p5 = por %p1501_p4, %p1500_p1 }
  0x25   : > { %p1496_p0 = pneg %p1495_p13 }
  0x27   : > { %p1503_p10 = pnand %p1502_p5, %p1496_p0 }
  0x29   : > { %1506 = shalt.err (!%p1503_p10)
}
  0x2a   : > { %s1931_s13 = smov 128   ;;  %s1932_s14 = smov 8  }
  0x2b   : > { %1344 = dma.hbm_to_vmem [thread:$0]  (!%p1719_p11), %s1925_s2, 4096, %s181_s6, [#allocation7], %s1931_s13, %s1931_s13, %s1932_s14  }
  0x2c   : > { %s33_s28 = sadd.s32 1, %s1615_s19  ;;  %s42_s29 = sadd.s32 1, %s1607_s17 }
  0x2d   : > { %p35_p1 = scmp.ge.s32.totalorder %s33_s28, 2  ;;  %p49_p4 = scmp.ne.s32.totalorder %s1607_s17, %s1603_s16 }
  0x2e   : > { %p50_p6 = scmp.eq.s32.totalorder %s1619_s20, 0  ;;  %p1355_p12 = scmp.lt.s32.totalorder %s1619_s20, 2 }
  0x2f   : > { %s1953_s28 = smov (%p35_p1, %s33_s28), 0  ;;  %p1754_p7 = por %p1694_p2, %p49_p4 }
  0x30   : > { %p51_p3 = por %p50_p6, %p49_p4  ;;  %s37_s5 = ssub.s32 %s1615_s19, %s1953_s28 }
  0x31   : > { %s197_s7 = sand.u32 1, %s1607_s17   ;;  %p40_p9 = scmp.eq.s32.totalorder %s37_s5, 0 }
  0x32   : > { %s1091_s6 = sshll.u32 %s197_s7, 7  ;;  %s1141_s8 = sshll.u32 %s1615_s19, 11 }
  0x33   : > { %s1763_s9 = scalar_select %p40_p9, %s1607_s17, %s42_s29  }
  0x34   : > { %s210_s12 = scalar_lea.hbm %s1923_s0, %s1141_s8  ;;  %s201_s21 = scalar_lea.vmem [#allocation3], %s1091_s6 }
  0x35   : > { %s211_s22 = sshll.u32 %s201_s21, 4  ;;  %p1770_p11 = pnand %p1355_p12, %p51_p3  ;;  %s212_s22 = int_to_ptr.vmem [resolvable:$true] %s211_s22 }
  0x36   : > { %s198_s13 = scalar_lea.sflag [#allocation4], %s197_s7  ;;  %s1520_s5 = scalar_lea.vmem %s212_s22, 2048 }
  0x37   : > { %p1509_p2 = pneg %p1770_p11  ;;  %p1521_p13 = scmp.ne.s32.totalorder %s212_s22, %s1520_s5 }
  0x38   : > { %s1627_s29 = smov [#allocation3]  }
  0x39   : > { %p1523_p0 = pnand %p1521_p13, %p1509_p2  ;;  %s1525_s14 = sshll.u32 %s1627_s29, 4  ;;  %s1526_s14 = int_to_ptr.vmem [resolvable:$false] %s1525_s14 }
  0x3a   : > { %s1527_s8 = scalar_lea.vmem %s1526_s14, 4096  ;;  %p1528_p10 = scmp.lt.s32.totalorder %s212_s22, %s1526_s14 }
  0x3b   : > { %p1524_p5 = pneg %p1523_p0  ;;  %p1529_p1 = scmp.lt.s32.totalorder %s1527_s8, %s1520_s5 }
  0x3d   : > { %p1530_p4 = por %p1529_p1, %p1528_p10 }
  0x3f   : > { %p1531_p6 = pnand %p1530_p4, %p1524_p5 }
  0x41   : > { %1534 = shalt.err (!%p1531_p6)
}
  0x42   : > { %s1941_s6 = smov 8   ;;  %s1942_s10 = smov 128  }
  0x43   : > { %1348 = dma.hbm_to_vmem [thread:$0]  (!%p1770_p11), %s210_s12, 2048, %s212_s22, %s198_s13, %s1942_s10, %s1942_s10, %s1941_s6  }
  0x44   : > { %223 = sbr.rel (%p1710_p8) target bundleno = 582 (0x246), region = 36  ;;  %s1784_s7 = sand.u32 (!%p1710_p8), 1, %s1603_s16  }
  0x45   : > { %s1096_s14 = sshll.u32 (!%p1710_p8), %s1784_s7, 7  ;;  %s226_s11 = scalar_lea.sflag (!%p1710_p8), [#allocation4], %s1784_s7 }
  0x46   : > { %s1790_s21 = scalar_lea.vmem (!%p1710_p8), [#allocation3], %s1096_s14  ;;  %p1943_p12 = scmp.ne.s32.totalorder (!%p1710_p8), %s1935_s25, 0 }
  0x49   : > { %1586 = dma.done.wait (%p1943_p12), %s226_s11, 2048  }
  0x4a   : > { %1588 = vsyncadd (%p1943_p12), %s226_s11, 4294965248  ;;  %p1944_p3 = scmp.ne.s32.totalorder %s1933_s23, 0 }
  0x4c   : > { %1590 = dma.done.wait (%p1944_p3), [#allocation7], 6144  }
  0x4d   : > { %1592 = vsyncadd (%p1944_p3), [#allocation7], 4294961152  ;;  %v1415_v0 = vld [vmem:[#allocation6 + $0x78] sm:$0xff]   ;;  %v1417_v2 = vld [vmem:[#allocation6 + $0x70] sm:$0xff]   ;;  %s1100_s23 = sshll.u32 %s1611_s18, 7  ;;  %s1835_s24 = scalar_lea.vmem [#allocation9], %s1096_s14 }
  0x4e   : > { %v1416_v1 = vld [vmem:[#allocation6 + $0x38] sm:$0xff]   ;;  %1182 = vmatprep.subr.bf16.mxu0 %v1415_v0  ;;  %v1418_v3 = vld [vmem:[#allocation6 + $0x30] sm:$0xff]   ;;  %v1419_v4 = vld [vmem:[#allocation6 + $0x68] sm:$0xff]   ;;  %s287_s25 = sshra.s32 %s1100_s23, 3  ;;  %s1142_s5 = sshll.u32 %s1611_s18, 11 }
  0x4f   : > { %1183 = vmatpush3.bf16.msra.mxu0 %v1416_v1  ;;  %v1420_v5 = vld [vmem:[#allocation6 + $0x28] sm:$0xff]   ;;  %v1421_v6 = vld [vmem:[#allocation6 + $0x60] sm:$0xff]   ;;  %v1423_v8 = vld [vmem:[#allocation6 + $0x58] sm:$0xff]   ;;  %s1101_s27 = sshll.u32 %s287_s25, 2  ;;  %s978_s29 = sshll.u32 %s1835_s24, 4  ;;  %s1874_s29 = int_to_ptr.vmem [resolvable:$true] %s978_s29 }
  0x50   : > { %1184 = vmatprep.subr.bf16.mxu0 %v1417_v2  ;;  %v1422_v7 = vld [vmem:[#allocation6 + $0x20] sm:$0xff]   ;;  %v1424_v9 = vld [vmem:[#allocation6 + $0x18] sm:$0xff]   ;;  %v1425_v10 = vld [vmem:[#allocation6 + $0x50] sm:$0xff]   ;;  %s1817_s13 = scalar_lea.vmem [#allocation6], %s1101_s27  ;;  %s1872_s10 = scalar_lea.hbm %s1927_s4, %s1142_s5 }
  0x51   : > { %v1433_v11 = vld [vmem:[%s1790_s21 + $0x4] ss:$8 sps:$4 sm:$0xff]   ;;  %v1426_v12 = vld [vmem:[#allocation6 + $0x10] sm:$0xff]   ;;  %v779_v17 = vld [vmem:[#allocation8 + $0xf8] sm:$0xff]  ;;  %s965_s14 = scalar_lea.sflag [#allocation5], %s1784_s7  ;;  %s1535_s11 = scalar_lea.vmem %s1874_s29, 2048 }
  0x52   : > { %616 = vmatprep.mubr.bf16.mxu0 %v1433_v11  ;;  %v1427_v13 = vld [vmem:[#allocation6 + $0x48] sm:$0xff]   ;;  %v1429_v15 = vld [vmem:[#allocation6 + $0x40] sm:$0xff]   ;;  %1246 = vmatprep.subr.mxu1 %v779_v17  ;;  %v763_v18 = vld [vmem:[#allocation8 + $0x78] sm:$0xff]  ;;  %p1536_p8 = scmp.ne.s32.totalorder %s1874_s29, %s1535_s11  ;;  %s1628_s18 = smov [#allocation9]  }
  0x53   : > { %1185 = vmatpush3.bf16.msra.mxu0 %v1418_v3  ;;  %v1428_v14 = vld [vmem:[#allocation6 + $0x8] sm:$0xff]   ;;  %v1430_v16 = vld [vmem:[#allocation6] sm:$0xff]   ;;  %v778_v19 = vld [vmem:[#allocation8 + $0xf0] sm:$0xff]  ;;  %1247 = vmatpush3.msra.mxu1 %v763_v18 }
  0x54   : > { %1186 = vmatprep.subr.bf16.mxu0 %v1419_v4  ;;  %v762_v20 = vld [vmem:[#allocation8 + $0x70] sm:$0xff]  ;;  %v777_v21 = vld [vmem:[#allocation8 + $0xe8] sm:$0xff]  ;;  %1248 = vmatprep.subr.mxu1 %v778_v19  ;;  %v776_v24 = vld [vmem:[#allocation8 + $0xe0] sm:$0xff]  ;;  %p1537_p9 = pnand %p1536_p8, %p1754_p7 }
  0x55   : > { %v761_v22 = vld [vmem:[#allocation8 + $0x68] sm:$0xff]  ;;  %1249 = vmatpush3.msra.mxu1 %v762_v20  ;;  %v1434_v25 = vld [vmem:[%s1790_s21 + $0x14] ss:$8 sps:$4 sm:$0xff]   ;;  %v760_v26 = vld [vmem:[#allocation8 + $0x60] sm:$0xff] }
  0x56   : > { %v1431_v23 = vld [vmem:[%s1790_s21] ss:$8 sps:$4 sm:$0xff]   ;;  %1250 = vmatprep.subr.mxu1 %v777_v21  ;;  %v775_v27 = vld [vmem:[#allocation8 + $0xd8] sm:$0xff]  ;;  %v774_v29 = vld [vmem:[#allocation8 + $0xd0] sm:$0xff]  ;;  %p1538_p11 = pneg %p1537_p9 }
  0x57   : > { %1187 = vmatpush3.bf16.msra.mxu0 %v1420_v5  ;;  %1251 = vmatpush3.msra.mxu1 %v761_v22  ;;  %v759_v28 = vld [vmem:[#allocation8 + $0x58] sm:$0xff]  ;;  %v758_v30 = vld [vmem:[#allocation8 + $0x50] sm:$0xff]  ;;  %v773_v31 = vld [vmem:[#allocation8 + $0xc8] sm:$0xff] }
  0x58   : > { %1188 = vmatprep.subr.bf16.mxu0 %v1421_v6  ;;  %1252 = vmatprep.subr.mxu1 %v776_v24  ;;  %v757_v32 = vld [vmem:[#allocation8 + $0x48] sm:$0xff]  ;;  %v1436_v33 = vld [vmem:[%s1790_s21 + $0x10] ss:$8 sps:$4 sm:$0xff]   ;;  %v772_v34 = vld [vmem:[#allocation8 + $0xc0] sm:$0xff] }
  0x59   : > { %1253 = vmatpush3.msra.mxu1 %v760_v26  ;;  %v1437_v35 = vld [vmem:[%s1790_s21 + $0x24] ss:$8 sps:$4 sm:$0xff]   ;;  %v771_v37 = vld [vmem:[#allocation8 + $0xb8] sm:$0xff]  ;;  %v770_v39 = vld [vmem:[#allocation8 + $0xb0] sm:$0xff] }
  0x5a   : > { %1254 = vmatprep.subr.mxu1 %v775_v27  ;;  %v756_v36 = vld [vmem:[#allocation8 + $0x40] sm:$0xff]  ;;  %v755_v38 = vld [vmem:[#allocation8 + $0x38] sm:$0xff]  ;;  %v754_v40 = vld [vmem:[#allocation8 + $0x30] sm:$0xff] }
  0x5b   : > { %1189 = vmatpush3.bf16.msra.mxu0 %v1422_v7  ;;  %1255 = vmatpush3.msra.mxu1 %v759_v28  ;;  %v769_v41 = vld [vmem:[#allocation8 + $0xa8] sm:$0xff]  ;;  %v768_v44 = vld [vmem:[#allocation8 + $0xa0] sm:$0xff]  ;;  %v1440_v45 = vld [vmem:[%s1790_s21 + $0x34] ss:$8 sps:$4 sm:$0xff]  }
  0x5c   : > { %1190 = vmatprep.subr.bf16.mxu0 %v1423_v8  ;;  %1256 = vmatprep.subr.mxu1 %v774_v29  ;;  %v753_v42 = vld [vmem:[#allocation8 + $0x28] sm:$0xff]  ;;  %v752_v46 = vld [vmem:[#allocation8 + $0x20] sm:$0xff]  ;;  %v767_v47 = vld [vmem:[#allocation8 + $0x98] sm:$0xff] }
  0x5d   : > { %1257 = vmatpush3.msra.mxu1 %v758_v30  ;;  %v1439_v43 = vld [vmem:[%s1790_s21 + $0x20] ss:$8 sps:$4 sm:$0xff]   ;;  %v751_v48 = vld [vmem:[#allocation8 + $0x18] sm:$0xff]  ;;  %v766_v49 = vld [vmem:[#allocation8 + $0x90] sm:$0xff] }
  0x5e   : > { %1258 = vmatprep.subr.mxu1 %v773_v31  ;;  %v1442_v50 = vld [vmem:[%s1790_s21 + $0x30] ss:$8 sps:$4 sm:$0xff]   ;;  %v1443_v51 = vld [vmem:[%s1790_s21 + $0x44] ss:$8 sps:$4 sm:$0xff]   ;;  %v1445_v52 = vld [vmem:[%s1790_s21 + $0x40] ss:$8 sps:$4 sm:$0xff]  }
  0x5f   : > { %1191 = vmatpush3.bf16.msra.mxu0 %v1424_v9  ;;  %1259 = vmatpush3.msra.mxu1 %v757_v32  ;;  %v1446_v53 = vld [vmem:[%s1790_s21 + $0x54] ss:$8 sps:$4 sm:$0xff]   ;;  %v1448_v54 = vld [vmem:[%s1790_s21 + $0x50] ss:$8 sps:$4 sm:$0xff]   ;;  %v1449_v55 = vld [vmem:[%s1790_s21 + $0x64] ss:$8 sps:$4 sm:$0xff]  }
  0x60   : > { %1192 = vmatprep.subr.bf16.mxu0 %v1425_v10  ;;  %1260 = vmatprep.subr.mxu1 %v772_v34  ;;  %v1451_v56 = vld [vmem:[%s1790_s21 + $0x60] ss:$8 sps:$4 sm:$0xff]   ;;  %v1452_v57 = vld [vmem:[%s1790_s21 + $0x74] ss:$8 sps:$4 sm:$0xff]   ;;  %v1454_v58 = vld [vmem:[%s1790_s21 + $0x70] ss:$8 sps:$4 sm:$0xff]  }
  0x61   : > { %1261 = vmatpush3.msra.mxu1 %v756_v36  ;;  %v750_v59 = vld [vmem:[#allocation8 + $0x10] sm:$0xff]  ;;  %v765_v60 = vld [vmem:[#allocation8 + $0x88] sm:$0xff]  ;;  %v1144_v62 = vld [vmem:[%s1817_s13] sm:$0xff]   ;;  %s1539_s21 = sshll.u32 %s1628_s18, 4  ;;  %s1540_s21 = int_to_ptr.vmem [resolvable:$false] %s1539_s21 }
  0x62   : > { %1262 = vmatprep.subr.mxu1 %v771_v37  ;;  %v749_v61 = vld [vmem:[#allocation8 + $0x8] sm:$0xff]  ;;  %v764_v63 = vld [vmem:[#allocation8 + $0x80] sm:$0xff]  ;;  %v1145_v0 = vunpack.c.l.bf16 %v1144_v62  ;;  %v1146_v4 = vunpack.c.h.bf16 %v1144_v62  ;;  %v1177_v24 = vld [vmem:[%s1817_s13 + $0x18] sm:$0xff]   ;;  %s1541_s23 = scalar_lea.vmem %s1540_s21, 4096  ;;  %p1542_p2 = scmp.lt.s32.totalorder %s1874_s29, %s1540_s21 }
  0x63   : > { %1193 = vmatpush3.bf16.msra.mxu0 %v1426_v12  ;;  %1263 = vmatpush3.msra.mxu1 %v755_v38  ;;  %v748_v1 = vld [vmem:[#allocation8] sm:$0xff]  ;;  %v1175_v6 = vld [vmem:[%s1817_s13 + $0x8] sm:$0xff]   ;;  %v1157_v27 = vunpack.c.l.bf16 %v1177_v24  ;;  %v1158_v31 = vunpack.c.h.bf16 %v1177_v24  ;;  %p1543_p13 = scmp.lt.s32.totalorder %s1541_s23, %s1535_s11 }
  0x64   : > { %1194 = vmatprep.subr.bf16.mxu0 %v1427_v13  ;;  %1264 = vmatprep.subr.mxu1 %v770_v39  ;;  %v1149_v9 = vunpack.c.l.bf16 %v1175_v6  ;;  %v1150_v13 = vunpack.c.h.bf16 %v1175_v6 }
  0x65   : > { %1265 = vmatpush3.msra.mxu1 %v754_v40  ;;  %851 = vmatprep.mubr.f32.mxu1 %v1145_v0  ;;  %p1544_p0 = por %p1543_p13, %p1542_p2 }
  0x66   : > { %1266 = vmatprep.subr.mxu1 %v769_v41 }
  0x67   : > { %1195 = vmatpush3.bf16.msra.mxu0 %v1428_v14  ;;  %1267 = vmatpush3.msra.mxu1 %v753_v42  ;;  %v1179_v42 = vld [vmem:[%s1817_s13 + $0x28] sm:$0xff]   ;;  %p1545_p5 = pnand %p1544_p0, %p1538_p11 }
  0x68   : > { %1196 = vmatprep.subr.bf16.mxu0 %v1429_v15  ;;  %1268 = vmatprep.subr.mxu1 %v768_v44  ;;  %v1176_v15 = vld [vmem:[%s1817_s13 + $0x10] sm:$0xff]  }
  0x69   : > { %1269 = vmatpush3.msra.mxu1 %v752_v46  ;;  %v1153_v18 = vunpack.c.l.bf16 %v1176_v15  ;;  %v1154_v22 = vunpack.c.h.bf16 %v1176_v15 }
  0x6a   : > { %1270 = vmatprep.subr.mxu1 %v767_v47 }
  0x6b   : > { %1197 = vmatpush3.bf16.msra.mxu0 %v1430_v16  ;;  %1271 = vmatpush3.msra.mxu1 %v751_v48 }
  0x6c   : > { %1272 = vmatprep.subr.mxu1 %v766_v49  ;;  %v1166_v49 = vunpack.c.h.bf16 %v1179_v42 }
  0x6d   : > { %1273 = vmatpush3.msra.mxu1 %v750_v59 }
  0x6e   : > { %617 = vmatmul.mubr.bf16.vlgmr.msra.gmra.mxu0 %v1431_v23  ;;  %1274 = vmatprep.subr.mxu1 %v765_v60  ;;  %v1181_v60 = vld [vmem:[%s1817_s13 + $0x38] sm:$0xff]  }
  0x6f   : > { %624 = vmatprep.mubr.bf16.mxu0 %v1434_v25  ;;  %1275 = vmatpush3.msra.mxu1 %v749_v61 }
  0x70   : > { %1276 = vmatprep.subr.mxu1 %v764_v63  ;;  %v1173_v63 = vunpack.c.l.bf16 %v1181_v60 }
  0x71   : > { %1277 = vmatpush3.msra.mxu1 %v748_v1 }
  0x76   : > { %625 = vmatmul.mubr.bf16.gmra.mxu0 %v1436_v33  ;;  %v1178_v33 = vld [vmem:[%s1817_s13 + $0x20] sm:$0xff]  }
  0x77   : > { %632 = vmatprep.mubr.bf16.mxu0 %v1437_v35  ;;  %v1161_v36 = vunpack.c.l.bf16 %v1178_v33  ;;  %v1162_v40 = vunpack.c.h.bf16 %v1178_v33 }
  0x7e   : > { %633 = vmatmul.mubr.bf16.gmra.mxu0 %v1439_v43 }
  0x7f   : > { %640 = vmatprep.mubr.bf16.mxu0 %v1440_v45  ;;  %v1165_v45 = vunpack.c.l.bf16 %v1179_v42 }
  0x86   : > { %641 = vmatmul.mubr.bf16.gmra.mxu0 %v1442_v50 }
  0x87   : > { %648 = vmatprep.mubr.bf16.mxu0 %v1443_v51  ;;  %v1180_v51 = vld [vmem:[%s1817_s13 + $0x30] sm:$0xff]  }
  0x8e   : > { %649 = vmatmul.mubr.bf16.gmra.mxu0 %v1445_v52 }
  0x8f   : > { %656 = vmatprep.mubr.bf16.mxu0 %v1446_v53 }
  0x96   : > { %657 = vmatmul.mubr.bf16.gmra.mxu0 %v1448_v54  ;;  %v1169_v54 = vunpack.c.l.bf16 %v1180_v51 }
  0x97   : > { %664 = vmatprep.mubr.bf16.mxu0 %v1449_v55 }
  0x9e   : > { %665 = vmatmul.mubr.bf16.gmra.mxu0 %v1451_v56 }
  0x9f   : > { %672 = vmatprep.mubr.bf16.mxu0 %v1452_v57 }
  0xa6   : > { %673 = vmatmul.mubr.bf16.gmra.mxu0 %v1454_v58  ;;  %v1170_v58 = vunpack.c.h.bf16 %v1180_v51 }
 0x12e   : > { %v1198_v2 = vpop.f32.mrf.mxu0 }
 0x130   : > { %v1199_v3 = vpop.f32.mrf.mxu0 }
 0x131   : > { %v1200_v5 = vadd.f32 %v1199_v3, %v1198_v2  ;;  %v1174_v3 = vunpack.c.h.bf16 %v1181_v60 }
 0x132   : > { %v1201_v7 = vpop.f32.mrf.mxu0 }
 0x133   : > { %852 = vmatmul.mubr.f32.vlgmr.msra.gmra.mxu1 %v1200_v5 }
 0x134   : > { %v1202_v8 = vpop.f32.mrf.mxu0  ;;  %856 = vmatprep.mubr.f32.mxu1 %v1146_v4 }
 0x135   : > { %v1203_v10 = vadd.f32 %v1202_v8, %v1201_v7 }
 0x136   : > { %v1204_v11 = vpop.f32.mrf.mxu0 }
 0x137   : > { %857 = vmatmul.mubr.f32.gmra.mxu1 %v1203_v10 }
 0x138   : > { %v1205_v12 = vpop.f32.mrf.mxu0  ;;  %861 = vmatprep.mubr.f32.mxu1 %v1149_v9  ;;  %v1830_v9 = vld [vmem:[%s1926_s3] ss:$0 sm:$0xff] }
 0x139   : > { %v1206_v14 = vadd.f32 %v1205_v12, %v1204_v11 }
 0x13a   : > { %v1207_v16 = vpop.f32.mrf.mxu0 }
 0x13b   : > { %862 = vmatmul.mubr.f32.gmra.mxu1 %v1206_v14 }
 0x13c   : > { %v1208_v17 = vpop.f32.mrf.mxu0  ;;  %866 = vmatprep.mubr.f32.mxu1 %v1150_v13 }
 0x13d   : > { %v1209_v19 = vadd.f32 %v1208_v17, %v1207_v16 }
 0x13e   : > { %v1210_v20 = vpop.f32.mrf.mxu0 }
 0x13f   : > { %867 = vmatmul.mubr.f32.gmra.mxu1 %v1209_v19 }
 0x140   : > { %v1211_v21 = vpop.f32.mrf.mxu0  ;;  %871 = vmatprep.mubr.f32.mxu1 %v1153_v18 }
 0x141   : > { %v1212_v23 = vadd.f32 %v1211_v21, %v1210_v20 }
 0x142   : > { %v1213_v25 = vpop.f32.mrf.mxu0 }
 0x143   : > { %872 = vmatmul.mubr.f32.gmra.mxu1 %v1212_v23 }
 0x144   : > { %v1214_v26 = vpop.f32.mrf.mxu0  ;;  %876 = vmatprep.mubr.f32.mxu1 %v1154_v22 }
 0x145   : > { %v1215_v28 = vadd.f32 %v1214_v26, %v1213_v25 }
 0x146   : > { %v1216_v29 = vpop.f32.mrf.mxu0 }
 0x147   : > { %877 = vmatmul.mubr.f32.gmra.mxu1 %v1215_v28 }
 0x148   : > { %v1217_v30 = vpop.f32.mrf.mxu0  ;;  %881 = vmatprep.mubr.f32.mxu1 %v1157_v27 }
 0x149   : > { %v1218_v32 = vadd.f32 %v1217_v30, %v1216_v29 }
 0x14a   : > { %v1219_v34 = vpop.f32.mrf.mxu0 }
 0x14b   : > { %882 = vmatmul.mubr.f32.gmra.mxu1 %v1218_v32 }
 0x14c   : > { %v1220_v35 = vpop.f32.mrf.mxu0  ;;  %886 = vmatprep.mubr.f32.mxu1 %v1158_v31 }
 0x14d   : > { %v1221_v37 = vadd.f32 %v1220_v35, %v1219_v34 }
 0x14e   : > { %v1222_v38 = vpop.f32.mrf.mxu0 }
 0x14f   : > { %887 = vmatmul.mubr.f32.gmra.mxu1 %v1221_v37 }
 0x150   : > { %v1223_v39 = vpop.f32.mrf.mxu0  ;;  %891 = vmatprep.mubr.f32.mxu1 %v1161_v36 }
 0x151   : > { %v1224_v41 = vadd.f32 %v1223_v39, %v1222_v38 }
 0x152   : > { %v1225_v43 = vpop.f32.mrf.mxu0 }
 0x153   : > { %892 = vmatmul.mubr.f32.gmra.mxu1 %v1224_v41 }
 0x154   : > { %v1226_v44 = vpop.f32.mrf.mxu0  ;;  %896 = vmatprep.mubr.f32.mxu1 %v1162_v40 }
 0x155   : > { %v1227_v46 = vadd.f32 %v1226_v44, %v1225_v43 }
 0x156   : > { %v1228_v47 = vpop.f32.mrf.mxu0 }
 0x157   : > { %897 = vmatmul.mubr.f32.gmra.mxu1 %v1227_v46 }
 0x158   : > { %v1229_v48 = vpop.f32.mrf.mxu0  ;;  %901 = vmatprep.mubr.f32.mxu1 %v1165_v45 }
 0x159   : > { %v1230_v50 = vadd.f32 %v1229_v48, %v1228_v47 }
 0x15a   : > { %v1231_v52 = vpop.f32.mrf.mxu0 }
 0x15b   : > { %902 = vmatmul.mubr.f32.gmra.mxu1 %v1230_v50 }
 0x15c   : > { %v1232_v53 = vpop.f32.mrf.mxu0  ;;  %906 = vmatprep.mubr.f32.mxu1 %v1166_v49 }
 0x15d   : > { %v1233_v55 = vadd.f32 %v1232_v53, %v1231_v52 }
 0x15e   : > { %v1234_v56 = vpop.f32.mrf.mxu0 }
 0x15f   : > { %907 = vmatmul.mubr.f32.gmra.mxu1 %v1233_v55 }
 0x160   : > { %v1235_v57 = vpop.f32.mrf.mxu0  ;;  %911 = vmatprep.mubr.f32.mxu1 %v1169_v54 }
 0x161   : > { %v1236_v59 = vadd.f32 %v1235_v57, %v1234_v56 }
 0x162   : > { %v1237_v61 = vpop.f32.mrf.mxu0 }
 0x163   : > { %912 = vmatmul.mubr.f32.gmra.mxu1 %v1236_v59 }
 0x164   : > { %v1238_v62 = vpop.f32.mrf.mxu0  ;;  %916 = vmatprep.mubr.f32.mxu1 %v1170_v58 }
 0x165   : > { %v1239_v0 = vadd.f32 %v1238_v62, %v1237_v61 }
 0x166   : > { %v1240_v1 = vpop.f32.mrf.mxu0 }
 0x167   : > { %917 = vmatmul.mubr.f32.gmra.mxu1 %v1239_v0 }
 0x168   : > { %v1241_v2 = vpop.f32.mrf.mxu0  ;;  %921 = vmatprep.mubr.f32.mxu1 %v1173_v63 }
 0x169   : > { %v1242_v4 = vadd.f32 %v1241_v2, %v1240_v1 }
 0x16a   : > { %v1243_v5 = vpop.f32.mrf.mxu0 }
 0x16b   : > { %922 = vmatmul.mubr.f32.gmra.mxu1 %v1242_v4 }
 0x16c   : > { %v1244_v6 = vpop.f32.mrf.mxu0  ;;  %926 = vmatprep.mubr.f32.mxu1 %v1174_v3 }
 0x16d   : > { %v1245_v7 = vadd.f32 %v1244_v6, %v1243_v5 }
 0x16f   : > { %927 = vmatmul.mubr.f32.gmra.mxu1 %v1245_v7 }
 0x1f3   : > { %v1278_v8 = vpop.f32.mrf.mxu1 }
 0x1f5   : > { %v1279_v10 = vpop.f32.mrf.mxu1 }
 0x1f6   : > { %v1280_v11 = vadd.f32 %v1279_v10, %v1278_v8 }
 0x1f7   : > { %v1281_v12 = vpop.f32.mrf.mxu1 }
 0x1f8   : > { %v854_v13 = vadd.f32 %v1280_v11, %v1830_v9 }
 0x1f9   : > { %v1282_v14 = vpop.f32.mrf.mxu1 }
 0x1fa   : > { %v932_v15 = vmax.f32 %v854_v13, 0.0  ;;  %v1283_v16 = vadd.f32 %v1282_v14, %v1281_v12 }
 0x1fb   : > { %v1284_v17 = vpop.f32.mrf.mxu1 }
 0x1fc   : > { %948 = vst [vmem:[%s1835_s24] sm:$0xff] %v932_v15  ;;  %v859_v18 = vadd.f32 %v1283_v16, %v1830_v9 }
 0x1fd   : > { %v1285_v19 = vpop.f32.mrf.mxu1 }
 0x1fe   : > { %v933_v20 = vmax.f32 %v859_v18, 0.0  ;;  %v1286_v21 = vadd.f32 %v1285_v19, %v1284_v17 }
 0x1ff   : > { %v1287_v22 = vpop.f32.mrf.mxu1 }
 0x200   : > { %949 = vst [vmem:[%s1835_s24 + $0x8] sm:$0xff] %v933_v20  ;;  %v864_v23 = vadd.f32 %v1286_v21, %v1830_v9 }
 0x201   : > { %v1288_v24 = vpop.f32.mrf.mxu1 }
 0x202   : > { %v934_v25 = vmax.f32 %v864_v23, 0.0  ;;  %v1289_v26 = vadd.f32 %v1288_v24, %v1287_v22 }
 0x203   : > { %v1290_v27 = vpop.f32.mrf.mxu1 }
 0x204   : > { %950 = vst [vmem:[%s1835_s24 + $0x10] sm:$0xff] %v934_v25  ;;  %v869_v28 = vadd.f32 %v1289_v26, %v1830_v9 }
 0x205   : > { %v1291_v29 = vpop.f32.mrf.mxu1 }
 0x206   : > { %v935_v30 = vmax.f32 %v869_v28, 0.0  ;;  %v1292_v31 = vadd.f32 %v1291_v29, %v1290_v27 }
 0x207   : > { %v1293_v32 = vpop.f32.mrf.mxu1 }
 0x208   : > { %951 = vst [vmem:[%s1835_s24 + $0x18] sm:$0xff] %v935_v30  ;;  %v874_v33 = vadd.f32 %v1292_v31, %v1830_v9 }
 0x209   : > { %v1294_v34 = vpop.f32.mrf.mxu1 }
 0x20a   : > { %v936_v35 = vmax.f32 %v874_v33, 0.0  ;;  %v1295_v36 = vadd.f32 %v1294_v34, %v1293_v32 }
 0x20b   : > { %v1296_v37 = vpop.f32.mrf.mxu1 }
 0x20c   : > { %952 = vst [vmem:[%s1835_s24 + $0x20] sm:$0xff] %v936_v35  ;;  %v879_v38 = vadd.f32 %v1295_v36, %v1830_v9 }
 0x20d   : > { %v1297_v39 = vpop.f32.mrf.mxu1 }
 0x20e   : > { %v937_v40 = vmax.f32 %v879_v38, 0.0  ;;  %v1298_v41 = vadd.f32 %v1297_v39, %v1296_v37 }
 0x20f   : > { %v1299_v42 = vpop.f32.mrf.mxu1 }
 0x210   : > { %953 = vst [vmem:[%s1835_s24 + $0x28] sm:$0xff] %v937_v40  ;;  %v884_v43 = vadd.f32 %v1298_v41, %v1830_v9 }
 0x211   : > { %v1300_v44 = vpop.f32.mrf.mxu1 }
 0x212   : > { %v938_v45 = vmax.f32 %v884_v43, 0.0  ;;  %v1301_v46 = vadd.f32 %v1300_v44, %v1299_v42 }
 0x213   : > { %v1302_v47 = vpop.f32.mrf.mxu1 }
 0x214   : > { %954 = vst [vmem:[%s1835_s24 + $0x30] sm:$0xff] %v938_v45  ;;  %v889_v48 = vadd.f32 %v1301_v46, %v1830_v9 }
 0x215   : > { %v1303_v49 = vpop.f32.mrf.mxu1 }
 0x216   : > { %v939_v50 = vmax.f32 %v889_v48, 0.0  ;;  %v1304_v51 = vadd.f32 %v1303_v49, %v1302_v47 }
 0x217   : > { %v1305_v52 = vpop.f32.mrf.mxu1 }
 0x218   : > { %955 = vst [vmem:[%s1835_s24 + $0x38] sm:$0xff] %v939_v50  ;;  %v894_v53 = vadd.f32 %v1304_v51, %v1830_v9 }
 0x219   : > { %v1306_v54 = vpop.f32.mrf.mxu1 }
 0x21a   : > { %v940_v55 = vmax.f32 %v894_v53, 0.0  ;;  %v1307_v56 = vadd.f32 %v1306_v54, %v1305_v52 }
 0x21b   : > { %v1308_v57 = vpop.f32.mrf.mxu1 }
 0x21c   : > { %956 = vst [vmem:[%s1835_s24 + $0x40] sm:$0xff] %v940_v55  ;;  %v899_v58 = vadd.f32 %v1307_v56, %v1830_v9 }
 0x21d   : > { %v1309_v59 = vpop.f32.mrf.mxu1 }
 0x21e   : > { %v941_v60 = vmax.f32 %v899_v58, 0.0  ;;  %v1310_v61 = vadd.f32 %v1309_v59, %v1308_v57 }
 0x21f   : > { %v1311_v62 = vpop.f32.mrf.mxu1 }
 0x220   : > { %957 = vst [vmem:[%s1835_s24 + $0x48] sm:$0xff] %v941_v60  ;;  %v904_v63 = vadd.f32 %v1310_v61, %v1830_v9 }
 0x221   : > { %v1312_v0 = vpop.f32.mrf.mxu1 }
 0x222   : > { %v942_v1 = vmax.f32 %v904_v63, 0.0  ;;  %v1313_v2 = vadd.f32 %v1312_v0, %v1311_v62 }
 0x223   : > { %v1314_v3 = vpop.f32.mrf.mxu1 }
 0x224   : > { %958 = vst [vmem:[%s1835_s24 + $0x50] sm:$0xff] %v942_v1  ;;  %v909_v4 = vadd.f32 %v1313_v2, %v1830_v9 }
 0x225   : > { %v1315_v5 = vpop.f32.mrf.mxu1 }
 0x226   : > { %v943_v6 = vmax.f32 %v909_v4, 0.0  ;;  %v1316_v7 = vadd.f32 %v1315_v5, %v1314_v3 }
 0x227   : > { %v1317_v8 = vpop.f32.mrf.mxu1 }
 0x228   : > { %959 = vst [vmem:[%s1835_s24 + $0x58] sm:$0xff] %v943_v6  ;;  %v914_v10 = vadd.f32 %v1316_v7, %v1830_v9 }
 0x229   : > { %v1318_v11 = vpop.f32.mrf.mxu1 }
 0x22a   : > { %v944_v12 = vmax.f32 %v914_v10, 0.0  ;;  %v1319_v13 = vadd.f32 %v1318_v11, %v1317_v8 }
 0x22b   : > { %v1320_v14 = vpop.f32.mrf.mxu1 }
 0x22c   : > { %960 = vst [vmem:[%s1835_s24 + $0x60] sm:$0xff] %v944_v12  ;;  %v919_v15 = vadd.f32 %v1319_v13, %v1830_v9 }
 0x22d   : > { %v1321_v16 = vpop.f32.mrf.mxu1 }
 0x22e   : > { %v945_v17 = vmax.f32 %v919_v15, 0.0  ;;  %v1322_v18 = vadd.f32 %v1321_v16, %v1320_v14 }
 0x22f   : > { %v1323_v19 = vpop.f32.mrf.mxu1 }
 0x230   : > { %961 = vst [vmem:[%s1835_s24 + $0x68] sm:$0xff] %v945_v17  ;;  %v924_v20 = vadd.f32 %v1322_v18, %v1830_v9 }
 0x231   : > { %v1324_v21 = vpop.f32.mrf.mxu1 }
 0x232   : > { %v946_v22 = vmax.f32 %v924_v20, 0.0  ;;  %v1325_v23 = vadd.f32 %v1324_v21, %v1323_v19 }
 0x234   : > { %962 = vst [vmem:[%s1835_s24 + $0x70] sm:$0xff] %v946_v22  ;;  %v929_v24 = vadd.f32 %v1325_v23, %v1830_v9 }
 0x236   : > { %v947_v25 = vmax.f32 %v929_v24, 0.0 }
 0x238   : > { %963 = vst [vmem:[%s1835_s24 + $0x78] sm:$0xff] %v947_v25 }
 0x239   : > { %1548 = shalt.err (!%p1545_p5)
}
 0x23a   : > { %s1549_s25 = scalar_lea.hbm %s1872_s10, 2048  ;;  %s1553_s12 = scalar_lea.hbm %s1927_s4, 4096 }
 0x23b   : > { %p1550_p10 = scmp.ne.s32.totalorder %s1872_s10, %s1549_s25  ;;  %p1554_p6 = scmp.lt.s32.totalorder %s1872_s10, %s1927_s4 }
 0x23c   : > { %p1555_p12 = scmp.lt.s32.totalorder %s1553_s12, %s1549_s25 }
 0x23d   : > { %p1551_p1 = pnand %p1550_p10, %p1754_p7 }
 0x23e   : > { %p1556_p3 = por %p1555_p12, %p1554_p6 }
 0x23f   : > { %p1552_p4 = pneg %p1551_p1 }
 0x241   : > { %p1557_p8 = pnand %p1556_p3, %p1552_p4 }
 0x243   : > { %1560 = shalt.err (!%p1557_p8)
}
 0x244   : > { %s1629_s5 = smov 128   ;;  %s1630_s8 = smov 8  }
 0x245   : > { %1336 = dma.vmem_to_hbm [thread:$0]  (%p1754_p7), %s1874_s29, 2048, %s1872_s10, %s965_s14, %s1629_s5, %s1629_s5, %s1630_s8  }
 0x246 PF: > { %s993_s6 = sand.u32 1, %s1599_s15   ;;  %p1945_p9 = scmp.ne.s32.totalorder %s1936_s26, 0 }
 0x247   : > { %p1946_p11 = scmp.ge.s32.totalorder %s1619_s20, 2  ;;  %s994_s11 = scalar_lea.sflag [#allocation5], %s993_s6 }
 0x249   : > { %p1350_p2 = pnand %p1946_p11, %p1945_p9 }
 0x24b   : > { %p1351_p13 = pneg %p1350_p2 }
 0x24d   : > { %1594 = dma.done.wait (%p1351_p13), %s994_s11, 2048  }
 0x24e   : > { %1596 = vsyncadd (%p1351_p13), %s994_s11, 4294965248  ;;  %s21_s20 = sadd.s32 1, %s1619_s20   ;;  %s1947_s15 = smov %s1603_s16 }
 0x24f   : > { %p18_p0 = scmp.ge.s32.totalorder %s21_s20, 4   ;;  %s1948_s16 = smov %s1607_s17 }
 0x250   : > { %s1949_s17 = smov %s1763_s9  ;;  %s1950_s18 = smov %s1615_s19 }
 0x251   : > { %s1951_s19 = smov %s1953_s28  ;;  %20 = sbr.rel (!%p18_p0) target bundleno = 7 (0x7), region = 99 }
 0x256   :  { %999 = vsyncpa [#allocation4], 1 }
 0x257   :  { %1001 = vsyncpa [#allocation4 + $0x1], 1 }
 0x258   :  { %1002 = vsyncpa [#allocation7], 1 }
 0x259   :  { %1003 = vsyncpa [#allocation5], 1 }
 0x25a   :  { %1005 = vsyncpa [#allocation5 + $0x1], 1 }

</bundles_post_ra>
